<compile_context>
chip_gen: v6e
topology: v6e:2x2x1
jax: 0.10.0
libtpu: 0.0.40
codegen_flags: <defaults>
</compile_context>

<pallas_src>
import numpy as np

import jax
import jax.numpy as jnp
from jax.experimental import pallas as pl
from jax.experimental.pallas import tpu as pltpu

_LANES = 128            # vreg lane width
_MAX_BLOCK_ROWS = 2048  # 1 MiB f32 output block per grid step


def _gamma_pow_kernel(lane_pow_ref, row_pow_ref, out_ref):
    """out[r, l] = gamma**(128 * r_global + l) = row_pow[r] * lane_pow[l].

    Pure VPU broadcast-multiply: (block_rows, 1) * (1, 128) -> (block_rows, 128).
    No EUP work; the vst slot / HBM write path is the bottleneck, as intended.
    """
    out_ref[...] = row_pow_ref[...] * lane_pow_ref[...]


def _block_layout(steps):
    """Pick (rows_pad, block_rows, n_blocks) with minimal padding.

    rows_pad is a multiple of 8 (sublane) per block; padding is at most 7 rows
    per block (never rounded up to a full max-block multiple).  At least two
    grid blocks whenever rows_pad >= 16 so v7x can use both TensorCores.
    """
    rows = pl.cdiv(steps, _LANES)
    rows_pad = pl.cdiv(rows, 8) * 8
    n_blocks = max(pl.cdiv(rows_pad, _MAX_BLOCK_ROWS), 2 if rows_pad >= 16 else 1)
    block_rows = pl.cdiv(pl.cdiv(rows_pad, n_blocks), 8) * 8
    rows_pad = n_blocks * block_rows
    return rows_pad, block_rows, n_blocks


def gamma_weighting_forward(gamma_start, gamma_end, rampup_epochs, steps, epoch):
    """Pallas implementation of GammaWeighting.forward(steps, epoch)."""
    if steps == 0:
        return jnp.zeros((0,), jnp.float32)

    # Scalar schedule (identical to the PyTorch expression), on the host.
    ramp = min(epoch / rampup_epochs, 1)
    gamma = gamma_start + (gamma_end - gamma_start) * ramp
    assert gamma > 0, "GammaWeighting Pallas kernel requires gamma > 0"

    rows_pad, block_rows, n_blocks = _block_layout(steps)

    # Host precompute (float64 for accuracy, then cast).  These are *runtime*
    # inputs, so a new gamma each epoch never triggers a recompile.
    lane_pow = np.power(np.float64(gamma), np.arange(_LANES, dtype=np.float64))
    row_pow = np.power(np.float64(gamma),
                       np.float64(_LANES) * np.arange(rows_pad, dtype=np.float64))
    lane_pow = jnp.asarray(lane_pow.astype(np.float32).reshape(1, _LANES))
    row_pow = jnp.asarray(row_pow.astype(np.float32).reshape(rows_pad, 1))

    out = pl.pallas_call(
        _gamma_pow_kernel,
        out_shape=jax.ShapeDtypeStruct((rows_pad, _LANES), jnp.float32),
        grid=(n_blocks,),
        in_specs=[
            pl.BlockSpec((1, _LANES), lambda i: (0, 0)),        # lane powers (broadcast)
            pl.BlockSpec((block_rows, 1), lambda i: (i, 0)),    # per-row scales (tiled)
        ],
        out_specs=pl.BlockSpec((block_rows, _LANES), lambda i: (i, 0)),
        compiler_params=pltpu.CompilerParams(dimension_semantics=("parallel",)),
        cost_estimate=pl.CostEstimate(
            flops=rows_pad * _LANES,
            transcendentals=0,
            bytes_accessed=rows_pad * _LANES * 4 + rows_pad * 4 + _LANES * 4,
        ),
    )(lane_pow, row_pow)

    # Row-major flatten: element i lives at (i // 128, i % 128) == gamma**i.
    return out.reshape(-1)[:steps]                             # (steps,) like torch


class GammaWeighting:
    """JAX/Pallas port of hyblim.losses.GammaWeighting."""

    def __init__(self, gamma_start, gamma_end, rampup_epochs):
        self.gamma_start = gamma_start
        self.gamma_end = gamma_end
        self.rampup_epochs = rampup_epochs

    def __call__(self, steps, epoch):
        return gamma_weighting_forward(
            self.gamma_start, self.gamma_end, self.rampup_epochs, steps, epoch
        )


if __name__ == "__main__":
    # The module has no learned weights, only scheduler hyperparameters.
    gamma_start, gamma_end, rampup_epochs = 0.5, 0.99, 10

    # PRNGKey kept for convention; inputs are integer step/epoch counts.
    _ = jax.random.PRNGKey(0)
    module = GammaWeighting(gamma_start, gamma_end, rampup_epochs)

    def _ref(steps, epoch):
        g = gamma_start + (gamma_end - gamma_start) * min(epoch / rampup_epochs, 1)
        return np.power(np.float64(g), np.arange(steps, dtype=np.float64)).astype(np.float32)

    # Primary small case (steps=8, epoch=3).
    steps, epoch = 8, 3
    out = jax.block_until_ready(module(steps, epoch))
    assert out.shape == (steps,) and out.dtype == jnp.float32
    assert jnp.allclose(out, _ref(steps, epoch), rtol=1e-5, atol=1e-7)

    # Case spanning multiple 128-lane rows (exercises the row-scale path).
    steps2, epoch2 = 300, 20
    out2 = jax.block_until_ready(module(steps2, epoch2))
    assert out2.shape == (steps2,) and out2.dtype == jnp.float32
    assert jnp.allclose(out2, _ref(steps2, epoch2), rtol=1e-5, atol=1e-7)

    # Case large enough to split into >=2 grid blocks (exercises the grid path).
    steps3, epoch3 = 3000, 12
    out3 = jax.block_until_ready(module(steps3, epoch3))
    assert out3.shape == (steps3,) and out3.dtype == jnp.float32
    assert jnp.allclose(out3, _ref(steps3, epoch3), rtol=1e-4, atol=1e-12)

    # steps == 0 edge case (no kernel launch).
    out0 = jax.block_until_ready(module(0, 1))
    assert out0.shape == (0,) and out0.dtype == jnp.float32

    print("KERNEL_OK")
</pallas_src>

<mosaic_0001>
module attributes {stable_mosaic.version = 11 : i64} {
  func.func @_gamma_pow_kernel(%arg0: i32, %arg1: memref<1x128xf32, #tpu.memory_space<vmem>>, %arg2: memref<8x1xf32, #tpu.memory_space<vmem>>, %arg3: memref<8x128xf32, #tpu.memory_space<vmem>>) attributes {dimension_semantics = [#tpu.dimension_semantics<parallel>], iteration_bounds = array<i64: 1>, scalar_prefetch = 0 : i64, scratch_operands = 0 : i64, tpu.core_type = #tpu.core_type<tc>, window_params = [{pipeline_mode = #tpu.pipeline_mode<synchronous>, transform_indices = @transform_0, window_bounds = array<i64: 1, 128>}, {transform_indices = @transform_1, window_bounds = array<i64: 8, 1>}, {transform_indices = @transform_2, window_bounds = array<i64: 8, 128>}]} {
    %c0 = arith.constant 0 : index
    %c0_0 = arith.constant 0 : index
    %0 = vector.load %arg2[%c0, %c0_0] : memref<8x1xf32, #tpu.memory_space<vmem>>, vector<8x1xf32>
    %c0_1 = arith.constant 0 : index
    %c0_2 = arith.constant 0 : index
    %1 = vector.load %arg1[%c0_1, %c0_2] : memref<1x128xf32, #tpu.memory_space<vmem>>, vector<1x128xf32>
    %2 = vector.broadcast %0 : vector<8x1xf32> to vector<8x128xf32>
    %3 = vector.broadcast %1 : vector<1x128xf32> to vector<8x128xf32>
    %4 = arith.mulf %2, %3 : vector<8x128xf32>
    %c0_3 = arith.constant 0 : index
    %c0_4 = arith.constant 0 : index
    %5 = vector.load %arg3[%c0_3, %c0_4] : memref<8x128xf32, #tpu.memory_space<vmem>>, vector<8x128xf32>
    tpu.vector_store %arg3[%c0_3, %c0_4], %4 {strides = array<i32>} : memref<8x128xf32, #tpu.memory_space<vmem>>, vector<8x128xf32>,
    return
  }
  func.func @transform_0(%arg0: i32) -> (i32, i32) {
    %c0_i32 = arith.constant 0 : i32
    %c0_i32_0 = arith.constant 0 : i32
    %c0_i32_1 = arith.constant 0 : i32
    return %c0_i32, %c0_i32_0 : i32, i32
  }
  func.func @transform_1(%arg0: i32) -> (i32, i32) {
    %c0_i32 = arith.constant 0 : i32
    %c0_i32_0 = arith.constant 0 : i32
    return %arg0, %c0_i32 : i32, i32
  }
  func.func @transform_2(%arg0: i32) -> (i32, i32) {
    %c0_i32 = arith.constant 0 : i32
    %c0_i32_0 = arith.constant 0 : i32
    return %arg0, %c0_i32 : i32, i32
  }
}

</mosaic_0001>

<bundles_post_ra>
// kernel: tpu_custom_call.1
= control target key start
LH: loop header
LB: loop body
LE: loop exit
PB: predicated region body
PF: predicated region fallthrough
CT: control target
= control target key end

     0   :  { %s93_s0 = inlined_call_operand.vmem [shape: f32[1,128], index: 0, kind: input, shape index: {}]   ;;  %s94_s1 = inlined_call_operand.vmem [shape: f32[8,1], index: 1, kind: input, shape index: {}]   ;;  %s95_s2 = inlined_call_operand.hbm [shape: f32[8,128], index: 2, kind: output, shape index: {}]  }
   0x1   :  { %v12_v0 = vld [vmem:[%s94_s1] sm:$0xff] }
   0x2   :  { %7 = vsyncpa [#allocation3], 0  ;;  %v67_v1 = vmov 0   ;;  %v41_v2 = vld [vmem:[%s93_s0] ss:$0 sm:$0xff]  ;;  %s68_s13 = smov [#allocation2]  }
   0x3   :  { %44 = vset.pattern.permute.xlu0 %v67_v1  ;;  %s33_s14 = sshll.u32 %s68_s13, 4  ;;  %s34_s14 = int_to_ptr.vmem [resolvable:$true] %s33_s14 }
   0x4   :  { %16 = vperm.xlu0 %44, %v12_v0   ;;  %s45_s15 = scalar_lea.vmem %s34_s14, 128  ;;  %p50_p1 = scmp.lt.s32.totalorder %s34_s14, %s34_s14 }
   0x5   :  { %p46_p0 = scmp.ne.s32.totalorder %s34_s14, %s45_s15  ;;  %p51_p2 = scmp.lt.s32.totalorder %s45_s15, %s45_s15 }
   0x7   :  { %p52_p3 = por %p51_p2, %p50_p1 }
   0x9   :  { %p53_p4 = pnand %p52_p3, %p46_p0 }
  0x7f   :  { %v17_v3 = vpop.permute.xlu0 %16 }
  0x80   :  { %v25_v4 = vmul.f32 %v41_v2, %v17_v3 }
  0x82   :  { %26 = vst [vmem:[#allocation2] sm:$0xff] %v25_v4 }
  0x83   :  { %56 = shalt.err (!%p53_p4)
}
  0x84   :  { %36 = dma.vmem_to_hbm [thread:$0]  %s34_s14, 128, %s95_s2, [#allocation3]  }
  0x85   :  { %65 = dma.done.wait [#allocation3], 128  }
  0x86   :  { %66 = vsyncadd [#allocation3], 4294967168 }
  0x87   :  { %40 = vsyncpa [#allocation3], 1 }

</bundles_post_ra>
